<compile_context>
chip_gen: v5e
topology: v5e:2x2
jax: 0.10.0
libtpu: 0.0.40
codegen_flags: <defaults>
</compile_context>

<pallas_src>
import functools

import jax
import jax.numpy as jnp
from jax.experimental import pallas as pl
from jax.experimental.pallas import tpu as pltpu


# ---------------------------------------------------------------------------
# Fused Pallas head kernel:
#   SigmaPi -> BatchNorm1d (inference affine) -> Linear+ReLU -> Linear (classifier)
# ---------------------------------------------------------------------------
def _sigma_pi_head_kernel(
    x_ref,      # (TB, input_dim)      f32
    spw_ref,    # (F, gs, hidden)      bf16   per-factor weights (torch W.T stacked)
    spb_ref,    # (F, 1, hidden)       f32
    bnsc_ref,   # (1, hidden)          f32    gamma / sqrt(var + eps)
    bnsh_ref,   # (1, hidden)          f32    beta  - mean * scale
    sw_ref,     # (hidden, hidden)     bf16
    sb_ref,     # (1, hidden)          f32
    cw_ref,     # (hidden, classes)    bf16
    cb_ref,     # (1, classes)         f32
    o_ref,      # (TB, classes)        f32
):
    F, gs, _ = spw_ref.shape
    x = x_ref[...].astype(jnp.bfloat16)          # single load + single cast

    # SigmaPi: per-factor Linear + ReLU, running elementwise product (kept in f32 regs).
    prod = None
    for f in range(F):                           # F is small & static -> fully unrolled
        xg = x[:, f * gs:(f + 1) * gs]           # static lane slice, no host transpose
        y = jnp.dot(xg, spw_ref[f], preferred_element_type=jnp.float32)
        y = jnp.maximum(y + spb_ref[f], 0.0)
        prod = y if prod is None else prod * y

    # BatchNorm1d (inference) folded into one affine.
    h = prod * bnsc_ref[...] + bnsh_ref[...]

    # Linear(hidden, hidden) + ReLU  (dropout is identity in eval mode).
    h = jnp.dot(h.astype(jnp.bfloat16), sw_ref[...],
                preferred_element_type=jnp.float32) + sb_ref[...]
    h = jnp.maximum(h, 0.0)

    # Classifier Linear(hidden, classes); only HBM store of the whole head.
    o_ref[...] = jnp.dot(h.astype(jnp.bfloat16), cw_ref[...],
                         preferred_element_type=jnp.float32) + cb_ref[...]


def sigma_pi_head_forward(feats, sp_w, sp_b, bn_gamma, bn_beta, bn_mean, bn_var,
                          sig_w, sig_b, cls_w, cls_b):
    """feats: (B, input_dim) f32. Weight stacks are stored as torch W.T (in, out)."""
    B, input_dim = feats.shape
    F, gs, hidden = sp_w.shape
    classes = cls_w.shape[1]
    assert input_dim == F * gs

    TB = B if B <= 256 else 256                  # batch tile (re-derive for huge B)
    assert B % TB == 0
    grid = (B // TB,)

    eps = 1e-5
    scale = bn_gamma / jnp.sqrt(bn_var + eps)            # (hidden,)
    shift = bn_beta - bn_mean * scale                    # (hidden,)

    # bf16 MXU operands (halves weight DMA); biases / affine params stay f32.
    spw = sp_w.astype(jnp.bfloat16)
    sw = sig_w.astype(jnp.bfloat16)
    cw = cls_w.astype(jnp.bfloat16)
    spb = sp_b.reshape(F, 1, hidden)
    sb = sig_b.reshape(1, hidden)
    cb = cls_b.reshape(1, classes)
    bn_scale = scale.reshape(1, hidden)
    bn_shift = shift.reshape(1, hidden)

    def full(shape):
        # Full-array block, constant block index -> stays resident in VMEM across the grid.
        return pl.BlockSpec(shape, lambda b, _n=len(shape): (0,) * _n)

    return pl.pallas_call(
        _sigma_pi_head_kernel,
        out_shape=jax.ShapeDtypeStruct((B, classes), jnp.float32),
        grid_spec=pltpu.PrefetchScalarGridSpec(
            num_scalar_prefetch=0,
            grid=grid,
            in_specs=[
                pl.BlockSpec((TB, input_dim), lambda b: (b, 0)),
                full((F, gs, hidden)),
                full((F, 1, hidden)),
                full((1, hidden)),
                full((1, hidden)),
                full((hidden, hidden)),
                full((1, hidden)),
                full((hidden, classes)),
                full((1, classes)),
            ],
            out_specs=pl.BlockSpec((TB, classes), lambda b: (b, 0)),
        ),
        compiler_params=pltpu.CompilerParams(
            dimension_semantics=("parallel",),   # batch tiles shard across TCs (v7x)
        ),
    )(feats, spw, spb, bn_scale, bn_shift, sw, sb, cw, cb)


# ---------------------------------------------------------------------------
# Plain-JAX conv feature extractor (eval mode) — see TODO(synk) above.
# ---------------------------------------------------------------------------
def _conv_bn_relu(x, w, b, gamma, beta, mean, var, eps=1e-5):
    y = jax.lax.conv_general_dilated(
        x, w, window_strides=(1, 1), padding=((1, 1), (1, 1)),
        dimension_numbers=("NCHW", "OIHW", "NCHW"))
    y = y + b[None, :, None, None]
    scale = gamma / jnp.sqrt(var + eps)
    y = (y - mean[None, :, None, None]) * scale[None, :, None, None] + beta[None, :, None, None]
    return jnp.maximum(y, 0.0)


def _maxpool2(x):
    return jax.lax.reduce_window(
        x, -jnp.inf, jax.lax.max,
        window_dimensions=(1, 1, 2, 2), window_strides=(1, 1, 2, 2), padding="VALID")


def features_forward(x, params):
    for i in range(3):
        c = params[f"conv{i}"]
        x = _conv_bn_relu(x, c["w"], c["b"], c["gamma"], c["beta"], c["mean"], c["var"])
        x = _maxpool2(x)
    x = jnp.mean(x, axis=(2, 3))          # AdaptiveAvgPool2d((1,1)) + flatten
    return x                              # Dropout: identity in eval mode


def head_apply(feats, params):
    sp, n1 = params["sigma_pi"], params["norm1"]
    sg, cl = params["sigma"], params["classifier"]
    return sigma_pi_head_forward(
        feats, sp["w"], sp["b"],
        n1["gamma"], n1["beta"], n1["mean"], n1["var"],
        sg["w"], sg["b"], cl["w"], cl["b"])


@jax.jit
def sigma_pi_sigma_net_forward(x, params):
    return head_apply(features_forward(x, params), params)


# ---------------------------------------------------------------------------
# Parameter init (torch nn.Linear / nn.Conv2d default: uniform +-1/sqrt(fan_in))
# ---------------------------------------------------------------------------
def init_params(key, *, num_classes=6, num_factors=4, hidden_dim=192):
    keys = iter(jax.random.split(key, 16))

    def uniform(k, shape, fan_in):
        bound = 1.0 / jnp.sqrt(jnp.float32(fan_in))
        return jax.random.uniform(k, shape, jnp.float32, -bound, bound)

    params = {}
    for i, (cin, cout) in enumerate([(3, 64), (64, 128), (128, 192)]):
        params[f"conv{i}"] = dict(
            w=uniform(next(keys), (cout, cin, 3, 3), cin * 9),
            b=uniform(next(keys), (cout,), cin * 9),
            gamma=jnp.ones((cout,), jnp.float32),
            beta=jnp.zeros((cout,), jnp.float32),
            mean=jnp.zeros((cout,), jnp.float32),
            var=jnp.ones((cout,), jnp.float32),
        )

    flatten_dim = 192
    assert flatten_dim % num_factors == 0
    gs = flatten_dim // num_factors
    params["sigma_pi"] = dict(
        w=uniform(next(keys), (num_factors, gs, hidden_dim), gs),   # torch W.T, stacked
        b=uniform(next(keys), (num_factors, hidden_dim), gs),
    )
    # Randomized BN1d running stats so the in-kernel affine is exercised non-trivially.
    params["norm1"] = dict(
        gamma=jax.random.uniform(next(keys), (hidden_dim,), jnp.float32, 0.5, 1.5),
        beta=0.1 * jax.random.normal(next(keys), (hidden_dim,), jnp.float32),
        mean=0.1 * jax.random.normal(next(keys), (hidden_dim,), jnp.float32),
        var=jax.random.uniform(next(keys), (hidden_dim,), jnp.float32, 0.5, 1.5),
    )
    params["sigma"] = dict(
        w=uniform(next(keys), (hidden_dim, hidden_dim), hidden_dim),
        b=uniform(next(keys), (hidden_dim,), hidden_dim),
    )
    params["classifier"] = dict(
        w=uniform(next(keys), (hidden_dim, num_classes), hidden_dim),
        b=uniform(next(keys), (num_classes,), hidden_dim),
    )
    return params


# ---------------------------------------------------------------------------
# Pure-JAX reference for the fused head (same bf16-operand matmul precision).
# ---------------------------------------------------------------------------
def head_reference(feats, params, eps=1e-5):
    sp, n1 = params["sigma_pi"], params["norm1"]
    sg, cl = params["sigma"], params["classifier"]
    F, gs, hidden = sp["w"].shape
    B = feats.shape[0]

    xg = feats.reshape(B, F, gs).astype(jnp.bfloat16)
    y = jnp.einsum("bfg,fgo->fbo", xg, sp["w"].astype(jnp.bfloat16),
                   preferred_element_type=jnp.float32) + sp["b"][:, None, :]
    y = jnp.maximum(y, 0.0)
    prod = jnp.prod(y, axis=0)

    scale = n1["gamma"] / jnp.sqrt(n1["var"] + eps)
    shift = n1["beta"] - n1["mean"] * scale
    h = prod * scale + shift

    h = jnp.dot(h.astype(jnp.bfloat16), sg["w"].astype(jnp.bfloat16),
                preferred_element_type=jnp.float32) + sg["b"]
    h = jnp.maximum(h, 0.0)
    logits = jnp.dot(h.astype(jnp.bfloat16), cl["w"].astype(jnp.bfloat16),
                     preferred_element_type=jnp.float32) + cl["b"]
    return logits


if __name__ == "__main__":
    num_classes, num_factors, hidden_dim = 6, 4, 192
    B, C, H, W = 2, 3, 16, 16

    key = jax.random.PRNGKey(0)
    kx, kp = jax.random.split(key)
    x = jax.random.normal(kx, (B, C, H, W), jnp.float32)
    params = init_params(kp, num_classes=num_classes, num_factors=num_factors,
                         hidden_dim=hidden_dim)

    # Full module forward (conv features in XLA, head in the fused Pallas kernel).
    logits = jax.block_until_ready(sigma_pi_sigma_net_forward(x, params))
    assert logits.shape == (B, num_classes)

    # Correctness check of the Pallas head against a pure-JAX reference on identical features.
    feats = jax.block_until_ready(features_forward(x, params))
    head_out = jax.block_until_ready(jax.jit(head_apply)(feats, params))
    ref_out = head_reference(feats, params)
    max_err = float(jnp.max(jnp.abs(head_out - ref_out)))
    assert jnp.allclose(head_out, ref_out, atol=2e-3, rtol=2e-2), (
        f"mismatch vs reference, max abs err {max_err:.3e}")

    print("KERNEL_OK")
</pallas_src>

<mosaic_0001>
module attributes {stable_mosaic.version = 11 : i64} {
  func.func @_sigma_pi_head_kernel(%arg0: i32, %arg1: memref<2x192xf32, #tpu.memory_space<vmem>>, %arg2: memref<4x48x192xbf16, #tpu.memory_space<vmem>>, %arg3: memref<4x1x192xf32, #tpu.memory_space<vmem>>, %arg4: memref<1x192xf32, #tpu.memory_space<vmem>>, %arg5: memref<1x192xf32, #tpu.memory_space<vmem>>, %arg6: memref<192x192xbf16, #tpu.memory_space<vmem>>, %arg7: memref<1x192xf32, #tpu.memory_space<vmem>>, %arg8: memref<192x6xbf16, #tpu.memory_space<vmem>>, %arg9: memref<1x6xf32, #tpu.memory_space<vmem>>, %arg10: memref<2x6xf32, #tpu.memory_space<vmem>>) attributes {dimension_semantics = [#tpu.dimension_semantics<parallel>], iteration_bounds = array<i64: 1>, scalar_prefetch = 0 : i64, scratch_operands = 0 : i64, tpu.core_type = #tpu.core_type<tc>, window_params = [{transform_indices = @transform_0, window_bounds = array<i64: 2, 192>}, {pipeline_mode = #tpu.pipeline_mode<synchronous>, transform_indices = @transform_1, window_bounds = array<i64: 4, 48, 192>}, {pipeline_mode = #tpu.pipeline_mode<synchronous>, transform_indices = @transform_2, window_bounds = array<i64: 4, 1, 192>}, {pipeline_mode = #tpu.pipeline_mode<synchronous>, transform_indices = @transform_3, window_bounds = array<i64: 1, 192>}, {pipeline_mode = #tpu.pipeline_mode<synchronous>, transform_indices = @transform_4, window_bounds = array<i64: 1, 192>}, {pipeline_mode = #tpu.pipeline_mode<synchronous>, transform_indices = @transform_5, window_bounds = array<i64: 192, 192>}, {pipeline_mode = #tpu.pipeline_mode<synchronous>, transform_indices = @transform_6, window_bounds = array<i64: 1, 192>}, {pipeline_mode = #tpu.pipeline_mode<synchronous>, transform_indices = @transform_7, window_bounds = array<i64: 192, 6>}, {pipeline_mode = #tpu.pipeline_mode<synchronous>, transform_indices = @transform_8, window_bounds = array<i64: 1, 6>}, {transform_indices = @transform_9, window_bounds = array<i64: 2, 6>}]} {
    %c0 = arith.constant 0 : index
    %c0_0 = arith.constant 0 : index
    %0 = vector.load %arg1[%c0, %c0_0] : memref<2x192xf32, #tpu.memory_space<vmem>>, vector<2x192xf32>
    %1 = arith.truncf %0 : vector<2x192xf32> to vector<2x192xbf16>
    %2 = vector.extract_strided_slice %1 {offsets = [0, 0], sizes = [2, 48], strides = [1, 1]} : vector<2x192xbf16> to vector<2x48xbf16>
    %c0_1 = arith.constant 0 : index
    %c0_2 = arith.constant 0 : index
    %c0_3 = arith.constant 0 : index
    %3 = vector.load %arg2[%c0_1, %c0_2, %c0_3] : memref<4x48x192xbf16, #tpu.memory_space<vmem>>, vector<1x48x192xbf16>
    %4 = vector.shape_cast %3 : vector<1x48x192xbf16> to vector<48x192xbf16>
    %cst = arith.constant dense<0.000000e+00> : vector<2x192xf32>
    %5 = tpu.matmul %2, %4, %cst {dimension_numbers = #tpu.dot_dimension_numbers<[1], [0], [0], [1], [0, 0, 1, 1], [], []>} : vector<2x48xbf16>, vector<48x192xbf16>, vector<2x192xf32> -> vector<2x192xf32>
    %c0_4 = arith.constant 0 : index
    %c0_5 = arith.constant 0 : index
    %c0_6 = arith.constant 0 : index
    %6 = vector.load %arg3[%c0_4, %c0_5, %c0_6] : memref<4x1x192xf32, #tpu.memory_space<vmem>>, vector<1x1x192xf32>
    %7 = vector.shape_cast %6 : vector<1x1x192xf32> to vector<1x192xf32>
    %8 = vector.broadcast %7 : vector<1x192xf32> to vector<2x192xf32>
    %9 = arith.addf %5, %8 : vector<2x192xf32>
    %cst_7 = arith.constant 0.000000e+00 : f32
    %10 = vector.broadcast %cst_7 : f32 to vector<2x192xf32>
    %11 = arith.maximumf %9, %10 : vector<2x192xf32>
    %12 = vector.extract_strided_slice %1 {offsets = [0, 48], sizes = [2, 48], strides = [1, 1]} : vector<2x192xbf16> to vector<2x48xbf16>
    %c1 = arith.constant 1 : index
    %c0_8 = arith.constant 0 : index
    %c0_9 = arith.constant 0 : index
    %13 = vector.load %arg2[%c1, %c0_8, %c0_9] : memref<4x48x192xbf16, #tpu.memory_space<vmem>>, vector<1x48x192xbf16>
    %14 = vector.shape_cast %13 : vector<1x48x192xbf16> to vector<48x192xbf16>
    %cst_10 = arith.constant dense<0.000000e+00> : vector<2x192xf32>
    %15 = tpu.matmul %12, %14, %cst_10 {dimension_numbers = #tpu.dot_dimension_numbers<[1], [0], [0], [1], [0, 0, 1, 1], [], []>} : vector<2x48xbf16>, vector<48x192xbf16>, vector<2x192xf32> -> vector<2x192xf32>
    %c1_11 = arith.constant 1 : index
    %c0_12 = arith.constant 0 : index
    %c0_13 = arith.constant 0 : index
    %16 = vector.load %arg3[%c1_11, %c0_12, %c0_13] : memref<4x1x192xf32, #tpu.memory_space<vmem>>, vector<1x1x192xf32>
    %17 = vector.shape_cast %16 : vector<1x1x192xf32> to vector<1x192xf32>
    %18 = vector.broadcast %17 : vector<1x192xf32> to vector<2x192xf32>
    %19 = arith.addf %15, %18 : vector<2x192xf32>
    %cst_14 = arith.constant 0.000000e+00 : f32
    %20 = vector.broadcast %cst_14 : f32 to vector<2x192xf32>
    %21 = arith.maximumf %19, %20 : vector<2x192xf32>
    %22 = arith.mulf %11, %21 : vector<2x192xf32>
    %23 = vector.extract_strided_slice %1 {offsets = [0, 96], sizes = [2, 48], strides = [1, 1]} : vector<2x192xbf16> to vector<2x48xbf16>
    %c2 = arith.constant 2 : index
    %c0_15 = arith.constant 0 : index
    %c0_16 = arith.constant 0 : index
    %24 = vector.load %arg2[%c2, %c0_15, %c0_16] : memref<4x48x192xbf16, #tpu.memory_space<vmem>>, vector<1x48x192xbf16>
    %25 = vector.shape_cast %24 : vector<1x48x192xbf16> to vector<48x192xbf16>
    %cst_17 = arith.constant dense<0.000000e+00> : vector<2x192xf32>
    %26 = tpu.matmul %23, %25, %cst_17 {dimension_numbers = #tpu.dot_dimension_numbers<[1], [0], [0], [1], [0, 0, 1, 1], [], []>} : vector<2x48xbf16>, vector<48x192xbf16>, vector<2x192xf32> -> vector<2x192xf32>
    %c2_18 = arith.constant 2 : index
    %c0_19 = arith.constant 0 : index
    %c0_20 = arith.constant 0 : index
    %27 = vector.load %arg3[%c2_18, %c0_19, %c0_20] : memref<4x1x192xf32, #tpu.memory_space<vmem>>, vector<1x1x192xf32>
    %28 = vector.shape_cast %27 : vector<1x1x192xf32> to vector<1x192xf32>
    %29 = vector.broadcast %28 : vector<1x192xf32> to vector<2x192xf32>
    %30 = arith.addf %26, %29 : vector<2x192xf32>
    %cst_21 = arith.constant 0.000000e+00 : f32
    %31 = vector.broadcast %cst_21 : f32 to vector<2x192xf32>
    %32 = arith.maximumf %30, %31 : vector<2x192xf32>
    %33 = arith.mulf %22, %32 : vector<2x192xf32>
    %34 = vector.extract_strided_slice %1 {offsets = [0, 144], sizes = [2, 48], strides = [1, 1]} : vector<2x192xbf16> to vector<2x48xbf16>
    %c3 = arith.constant 3 : index
    %c0_22 = arith.constant 0 : index
    %c0_23 = arith.constant 0 : index
    %35 = vector.load %arg2[%c3, %c0_22, %c0_23] : memref<4x48x192xbf16, #tpu.memory_space<vmem>>, vector<1x48x192xbf16>
    %36 = vector.shape_cast %35 : vector<1x48x192xbf16> to vector<48x192xbf16>
    %cst_24 = arith.constant dense<0.000000e+00> : vector<2x192xf32>
    %37 = tpu.matmul %34, %36, %cst_24 {dimension_numbers = #tpu.dot_dimension_numbers<[1], [0], [0], [1], [0, 0, 1, 1], [], []>} : vector<2x48xbf16>, vector<48x192xbf16>, vector<2x192xf32> -> vector<2x192xf32>
    %c3_25 = arith.constant 3 : index
    %c0_26 = arith.constant 0 : index
    %c0_27 = arith.constant 0 : index
    %38 = vector.load %arg3[%c3_25, %c0_26, %c0_27] : memref<4x1x192xf32, #tpu.memory_space<vmem>>, vector<1x1x192xf32>
    %39 = vector.shape_cast %38 : vector<1x1x192xf32> to vector<1x192xf32>
    %40 = vector.broadcast %39 : vector<1x192xf32> to vector<2x192xf32>
    %41 = arith.addf %37, %40 : vector<2x192xf32>
    %cst_28 = arith.constant 0.000000e+00 : f32
    %42 = vector.broadcast %cst_28 : f32 to vector<2x192xf32>
    %43 = arith.maximumf %41, %42 : vector<2x192xf32>
    %44 = arith.mulf %33, %43 : vector<2x192xf32>
    %c0_29 = arith.constant 0 : index
    %c0_30 = arith.constant 0 : index
    %45 = vector.load %arg4[%c0_29, %c0_30] : memref<1x192xf32, #tpu.memory_space<vmem>>, vector<1x192xf32>
    %46 = vector.broadcast %45 : vector<1x192xf32> to vector<2x192xf32>
    %47 = arith.mulf %44, %46 : vector<2x192xf32>
    %c0_31 = arith.constant 0 : index
    %c0_32 = arith.constant 0 : index
    %48 = vector.load %arg5[%c0_31, %c0_32] : memref<1x192xf32, #tpu.memory_space<vmem>>, vector<1x192xf32>
    %49 = vector.broadcast %48 : vector<1x192xf32> to vector<2x192xf32>
    %50 = arith.addf %47, %49 : vector<2x192xf32>
    %51 = arith.truncf %50 : vector<2x192xf32> to vector<2x192xbf16>
    %c0_33 = arith.constant 0 : index
    %c0_34 = arith.constant 0 : index
    %52 = vector.load %arg6[%c0_33, %c0_34] : memref<192x192xbf16, #tpu.memory_space<vmem>>, vector<192x192xbf16>
    %cst_35 = arith.constant dense<0.000000e+00> : vector<2x192xf32>
    %53 = tpu.matmul %51, %52, %cst_35 {dimension_numbers = #tpu.dot_dimension_numbers<[1], [0], [0], [1], [0, 0, 1, 1], [], []>} : vector<2x192xbf16>, vector<192x192xbf16>, vector<2x192xf32> -> vector<2x192xf32>
    %c0_36 = arith.constant 0 : index
    %c0_37 = arith.constant 0 : index
    %54 = vector.load %arg7[%c0_36, %c0_37] : memref<1x192xf32, #tpu.memory_space<vmem>>, vector<1x192xf32>
    %55 = vector.broadcast %54 : vector<1x192xf32> to vector<2x192xf32>
    %56 = arith.addf %53, %55 : vector<2x192xf32>
    %cst_38 = arith.constant 0.000000e+00 : f32
    %57 = vector.broadcast %cst_38 : f32 to vector<2x192xf32>
    %58 = arith.maximumf %56, %57 : vector<2x192xf32>
    %59 = arith.truncf %58 : vector<2x192xf32> to vector<2x192xbf16>
    %c0_39 = arith.constant 0 : index
    %c0_40 = arith.constant 0 : index
    %60 = vector.load %arg8[%c0_39, %c0_40] : memref<192x6xbf16, #tpu.memory_space<vmem>>, vector<192x6xbf16>
    %cst_41 = arith.constant dense<0.000000e+00> : vector<2x6xf32>
    %61 = tpu.matmul %59, %60, %cst_41 {dimension_numbers = #tpu.dot_dimension_numbers<[1], [0], [0], [1], [0, 0, 1, 1], [], []>} : vector<2x192xbf16>, vector<192x6xbf16>, vector<2x6xf32> -> vector<2x6xf32>
    %c0_42 = arith.constant 0 : index
    %c0_43 = arith.constant 0 : index
    %62 = vector.load %arg9[%c0_42, %c0_43] : memref<1x6xf32, #tpu.memory_space<vmem>>, vector<1x6xf32>
    %63 = vector.broadcast %62 : vector<1x6xf32> to vector<2x6xf32>
    %64 = arith.addf %61, %63 : vector<2x6xf32>
    %c0_44 = arith.constant 0 : index
    %c0_45 = arith.constant 0 : index
    %65 = vector.load %arg10[%c0_44, %c0_45] : memref<2x6xf32, #tpu.memory_space<vmem>>, vector<2x6xf32>
    tpu.vector_store %arg10[%c0_44, %c0_45], %64 {strides = array<i32>} : memref<2x6xf32, #tpu.memory_space<vmem>>, vector<2x6xf32>,
    return
  }
  func.func @transform_0(%arg0: i32) -> (i32, i32) {
    %c0_i32 = arith.constant 0 : i32
    %c0_i32_0 = arith.constant 0 : i32
    return %arg0, %c0_i32 : i32, i32
  }
  func.func @transform_1(%arg0: i32) -> (i32, i32, i32) {
    %c0_i32 = arith.constant 0 : i32
    %c0_i32_0 = arith.constant 0 : i32
    %c0_i32_1 = arith.constant 0 : i32
    %c0_i32_2 = arith.constant 0 : i32
    return %c0_i32, %c0_i32_0, %c0_i32_1 : i32, i32, i32
  }
  func.func @transform_2(%arg0: i32) -> (i32, i32, i32) {
    %c0_i32 = arith.constant 0 : i32
    %c0_i32_0 = arith.constant 0 : i32
    %c0_i32_1 = arith.constant 0 : i32
    %c0_i32_2 = arith.constant 0 : i32
    return %c0_i32, %c0_i32_0, %c0_i32_1 : i32, i32, i32
  }
  func.func @transform_3(%arg0: i32) -> (i32, i32) {
    %c0_i32 = arith.constant 0 : i32
    %c0_i32_0 = arith.constant 0 : i32
    %c0_i32_1 = arith.constant 0 : i32
    return %c0_i32, %c0_i32_0 : i32, i32
  }
  func.func @transform_4(%arg0: i32) -> (i32, i32) {
    %c0_i32 = arith.constant 0 : i32
    %c0_i32_0 = arith.constant 0 : i32
    %c0_i32_1 = arith.constant 0 : i32
    return %c0_i32, %c0_i32_0 : i32, i32
  }
  func.func @transform_5(%arg0: i32) -> (i32, i32) {
    %c0_i32 = arith.constant 0 : i32
    %c0_i32_0 = arith.constant 0 : i32
    %c0_i32_1 = arith.constant 0 : i32
    return %c0_i32, %c0_i32_0 : i32, i32
  }
  func.func @transform_6(%arg0: i32) -> (i32, i32) {
    %c0_i32 = arith.constant 0 : i32
    %c0_i32_0 = arith.constant 0 : i32
    %c0_i32_1 = arith.constant 0 : i32
    return %c0_i32, %c0_i32_0 : i32, i32
  }
  func.func @transform_7(%arg0: i32) -> (i32, i32) {
    %c0_i32 = arith.constant 0 : i32
    %c0_i32_0 = arith.constant 0 : i32
    %c0_i32_1 = arith.constant 0 : i32
    return %c0_i32, %c0_i32_0 : i32, i32
  }
  func.func @transform_8(%arg0: i32) -> (i32, i32) {
    %c0_i32 = arith.constant 0 : i32
    %c0_i32_0 = arith.constant 0 : i32
    %c0_i32_1 = arith.constant 0 : i32
    return %c0_i32, %c0_i32_0 : i32, i32
  }
  func.func @transform_9(%arg0: i32) -> (i32, i32) {
    %c0_i32 = arith.constant 0 : i32
    %c0_i32_0 = arith.constant 0 : i32
    return %arg0, %c0_i32 : i32, i32
  }
}

</mosaic_0001>

<bundles_post_ra>
// kernel: sigma_pi_sigma_net_forward.1
= control target key start
LH: loop header
LB: loop body
LE: loop exit
PB: predicated region body
PF: predicated region fallthrough
CT: control target
= control target key end

     0   :  { %s1525_s0 = inlined_call_operand.vmem [shape: f32[2,192], index: 0, kind: input, shape index: {}]   ;;  %s1526_s1 = inlined_call_operand.vmem [shape: bf16[4,48,192], index: 1, kind: input, shape index: {}]   ;;  %s1527_s2 = inlined_call_operand.vmem [shape: f32[4,1,192], index: 2, kind: input, shape index: {}]   ;;  %s1528_s3 = inlined_call_operand.vmem [shape: f32[1,192], index: 3, kind: input, shape index: {}]   ;;  %s1529_s4 = inlined_call_operand.vmem [shape: f32[1,192], index: 4, kind: input, shape index: {}]   ;;  %s1530_s5 = inlined_call_operand.vmem [shape: bf16[192,192], index: 5, kind: input, shape index: {}]   ;;  %s1531_s6 = inlined_call_operand.vmem [shape: f32[1,192], index: 6, kind: input, shape index: {}]   ;;  %s1532_s7 = inlined_call_operand.vmem [shape: bf16[192,6], index: 7, kind: input, shape index: {}]   ;;  %s1533_s8 = inlined_call_operand.vmem [shape: f32[1,6], index: 8, kind: input, shape index: {}]   ;;  %s1534_s9 = inlined_call_operand.hbm [shape: f32[2,6], index: 9, kind: output, shape index: {}]  }
   0x1   :  { %v34_v0 = vld [vmem:[%s1525_s0] sm:$0xf]  ;;  %v1014_v2 = vld [vmem:[%s1526_s1 + $0x24] sm:$0xf0]  ;;  %v1013_v4 = vld [vmem:[%s1526_s1 + $0x24] sm:$0xf] }
   0x2   :  { %v755_v1 = vld [vmem:[%s1526_s1 + $0x20] sm:$0xf]  ;;  %36 = vst [vmem:[#allocation1] ss:$4 sm:$0xff] %v34_v0  ;;  %v757_v5 = vld [vmem:[%s1526_s1 + $0x28] sm:$0xf0] }
   0x3   :  { %v756_v3 = vor.u32 %v1014_v2, %v755_v1  ;;  %v747_v6 = vld [vmem:[%s1526_s1 + $0x10] sm:$0xf]  ;;  %v760_v7 = vor.u32 %v1013_v4, %v757_v5  ;;  %v1012_v8 = vld [vmem:[%s1526_s1 + $0x14] sm:$0xf0]  ;;  %v1011_v9 = vld [vmem:[%s1526_s1 + $0x14] sm:$0xf] }
   0x4   :  { %v749_v10 = vld [vmem:[%s1526_s1 + $0x18] sm:$0xf0]  ;;  %v748_v11 = vor.u32 %v1012_v8, %v747_v6  ;;  %v788_v12 = vld [vmem:[%s1526_s1 + $0x50] sm:$0xf]  ;;  %v1020_v13 = vld [vmem:[%s1526_s1 + $0x54] sm:$0xf0] }
   0x5   :  { %93 = vmatpush.bf16.msra.mxu0 %v756_v3  ;;  %v1019_v14 = vld [vmem:[%s1526_s1 + $0x54] sm:$0xf]  ;;  %106 = vmatpush.bf16.msra.mxu1 %v760_v7  ;;  %v752_v15 = vor.u32 %v1011_v9, %v749_v10  ;;  %v789_v16 = vor.u32 %v1020_v13, %v788_v12  ;;  %v790_v17 = vld [vmem:[%s1526_s1 + $0x58] sm:$0xf0]  ;;  %v739_v18 = vld [vmem:[%s1526_s1] sm:$0xf] }
   0x6   :  { %v1010_v19 = vld [vmem:[%s1526_s1 + $0x4] sm:$0xf0]  ;;  %v793_v20 = vor.u32 %v1019_v14, %v790_v17  ;;  %v1009_v21 = vld [vmem:[%s1526_s1 + $0x4] sm:$0xf]  ;;  %v741_v22 = vld [vmem:[%s1526_s1 + $0x8] sm:$0xf0] }
   0x7   :  { %v780_v23 = vld [vmem:[%s1526_s1 + $0x40] sm:$0xf]  ;;  %173 = vmatpush.bf16.msra.mxu2 %v789_v16  ;;  %v1018_v24 = vld [vmem:[%s1526_s1 + $0x44] sm:$0xf0]  ;;  %v1017_v25 = vld [vmem:[%s1526_s1 + $0x44] sm:$0xf]  ;;  %v740_v29 = vor.u32 %v1010_v19, %v739_v18  ;;  %v744_v33 = vor.u32 %v1009_v21, %v741_v22 }
   0x8   :  { %v782_v26 = vld [vmem:[%s1526_s1 + $0x48] sm:$0xf0]  ;;  %186 = vmatpush.bf16.msra.mxu3 %v793_v20  ;;  %v781_v30 = vor.u32 %v1018_v24, %v780_v23  ;;  %v772_v34 = vld [vmem:[%s1526_s1 + $0x30] sm:$0xf]  ;;  %v1016_v35 = vld [vmem:[%s1526_s1 + $0x34] sm:$0xf0] }
   0x9   :  { %v37_v27 = vld.sshfl [vmem:[#allocation1] sm:$0xff pattern:$0x73625140]  ;;  %v38_v28 = vld.sshfl [vmem:[#allocation1 + $0x8] sm:$0xff pattern:$0x73625140]  ;;  %94 = vmatpush.bf16.msra.mxu0 %v748_v11  ;;  %v785_v31 = vor.u32 %v1017_v25, %v782_v26  ;;  %107 = vmatpush.bf16.msra.mxu1 %v752_v15 }
   0xa   :  { %v41_v32 = vpack.c.bf16 %v38_v28, %v37_v27  ;;  %v1015_v36 = vld [vmem:[%s1526_s1 + $0x34] sm:$0xf]  ;;  %v774_v37 = vld [vmem:[%s1526_s1 + $0x38] sm:$0xf0]  ;;  %v821_v38 = vld [vmem:[%s1526_s1 + $0x80] sm:$0xf] }
   0xb   :  { %v1026_v39 = vld [vmem:[%s1526_s1 + $0x84] sm:$0xf0]  ;;  %174 = vmatpush.bf16.msra.mxu2 %v781_v30  ;;  %v1025_v42 = vld [vmem:[%s1526_s1 + $0x84] sm:$0xf]  ;;  %v823_v43 = vld [vmem:[%s1526_s1 + $0x88] sm:$0xf0] }
   0xc   :  { %v131_v40 = vunpack.c.l.b16 %v41_v32  ;;  %v822_v41 = vor.u32 %v1026_v39, %v821_v38  ;;  %187 = vmatpush.bf16.msra.mxu3 %v785_v31  ;;  %v826_v44 = vor.u32 %v1025_v42, %v823_v43 }
   0xd   :  { %95 = vmatpush.bf16.msra.mxu0 %v740_v29 }
   0xe   :  { %14 = vsyncpa [#allocation3], 0  ;;  %v132_v45 = vpack.c.b16 %v131_v40, %v131_v40  ;;  %108 = vmatpush.bf16.msra.mxu1 %v744_v33  ;;  %vm84_vm0 = vcmask 392192   ;;  %v773_v46 = vor.u32 %v1016_v35, %v772_v34  ;;  %v777_v47 = vor.u32 %v1015_v36, %v774_v37  ;;  %s1100_s22 = smov 32   ;;  %s1101_s23 = smov 80  }
   0xf   :  { %v212_v48 = vunpack.c.h.b16 %v41_v32  ;;  %s1102_s24 = smov 112   ;;  %v813_v50 = vld [vmem:[%s1526_s1 + $0x70] sm:$0xf]  ;;  %v1024_v51 = vld [vmem:[%s1526_s1 + $0x74] sm:$0xf0]  ;;  %vm218_vm1 = vcmask 261120  }
  0x10   :  { %214 = vrot.lane.b32.xlu1 %v132_v45, %s1100_s22  ;;  %133 = vrot.lane.b32.xlu0 %v132_v45, %s1101_s23  ;;  %v1023_v52 = vld [vmem:[%s1526_s1 + $0x74] sm:$0xf]  ;;  %v854_v53 = vld [vmem:[%s1526_s1 + $0xb0] sm:$0xf]  ;;  %v814_v55 = vor.u32 %v1024_v51, %v813_v50  ;;  %vm530_vm2 = vcmask 523264   ;;  %s1103_s13 = smov [#allocation2]  }
  0x11   :  { %258 = vmatpush.bf16.msrb.mxu0 %v822_v41  ;;  %762 = vmatmul.msk.bf16.vlgmr.msra.gmra.mxu1 %vm84_vm0, %v41_v32  ;;  %v213_v49 = vpack.c.b16 %v212_v48, %v212_v48  ;;  %v1032_v54 = vld [vmem:[%s1526_s1 + $0xb4] sm:$0xf0]  ;;  %v815_v56 = vld [vmem:[%s1526_s1 + $0x78] sm:$0xf0]  ;;  %v1031_v59 = vld [vmem:[%s1526_s1 + $0xb4] sm:$0xf] }
  0x12   :  { %271 = vmatpush.bf16.msrb.mxu1 %v826_v44  ;;  %761 = vmatmul.msk.bf16.vlgmr.msra.gmra.mxu0 %vm84_vm0, %v41_v32  ;;  %v855_v57 = vor.u32 %v1032_v54, %v854_v53  ;;  %v818_v58 = vor.u32 %v1023_v52, %v815_v56  ;;  %v856_v60 = vld [vmem:[%s1526_s1 + $0xb8] sm:$0xf0]  ;;  %v805_v61 = vld [vmem:[%s1526_s1 + $0x60] sm:$0xf]  ;;  %v1022_v63 = vld [vmem:[%s1526_s1 + $0x64] sm:$0xf0] }
  0x13   :  { %175 = vmatpush.bf16.msra.mxu2 %v773_v46  ;;  %188 = vmatpush.bf16.msra.mxu3 %v777_v47  ;;  %v859_v62 = vor.u32 %v1031_v59, %v856_v60  ;;  %v1021_v0 = vld [vmem:[%s1526_s1 + $0x64] sm:$0xf]  ;;  %v807_v1 = vld [vmem:[%s1526_s1 + $0x68] sm:$0xf0]  ;;  %v806_v2 = vor.u32 %v1022_v63, %v805_v61  ;;  %v846_v4 = vld [vmem:[%s1526_s1 + $0xa0] sm:$0xf] }
  0x14   :  { %v810_v3 = vor.u32 %v1021_v0, %v807_v1  ;;  %v1030_v5 = vld [vmem:[%s1526_s1 + $0xa4] sm:$0xf0]  ;;  %v1029_v7 = vld [vmem:[%s1526_s1 + $0xa4] sm:$0xf]  ;;  %v848_v8 = vld [vmem:[%s1526_s1 + $0xa8] sm:$0xf0] }
  0x15   :  { %259 = vmatpush.bf16.msrb.mxu0 %v814_v55  ;;  %v847_v6 = vor.u32 %v1030_v5, %v846_v4  ;;  %v851_v9 = vor.u32 %v1029_v7, %v848_v8  ;;  %v838_v10 = vld [vmem:[%s1526_s1 + $0x90] sm:$0xf]  ;;  %v1028_v11 = vld [vmem:[%s1526_s1 + $0x94] sm:$0xf0]  ;;  %v1027_v12 = vld [vmem:[%s1526_s1 + $0x94] sm:$0xf] }
  0x16   :  { %272 = vmatpush.bf16.msrb.mxu1 %v818_v58  ;;  %v839_v13 = vor.u32 %v1028_v11, %v838_v10  ;;  %v840_v14 = vld [vmem:[%s1526_s1 + $0x98] sm:$0xf0]  ;;  %v920_v16 = vld [vmem:[%s1530_s5 + $0x70] sm:$0xf]  ;;  %v1048_v17 = vld [vmem:[%s1530_s5 + $0x74] sm:$0xf0] }
  0x17   :  { %337 = vmatpush.bf16.msrb.mxu2 %v855_v57  ;;  %350 = vmatpush.bf16.msrb.mxu3 %v859_v62  ;;  %v843_v15 = vor.u32 %v1027_v12, %v840_v14  ;;  %v921_v18 = vor.u32 %v1048_v17, %v920_v16  ;;  %v1047_v19 = vld [vmem:[%s1530_s5 + $0x74] sm:$0xf]  ;;  %v922_v20 = vld [vmem:[%s1530_s5 + $0x78] sm:$0xf0]  ;;  %v912_v31 = vld [vmem:[%s1530_s5 + $0x60] sm:$0xf] }
  0x18   :  { %216 = vrot.lane.b32.xlu1 %v213_v49, %s1100_s22  ;;  %297 = vrot.lane.b32.xlu0 %v213_v49, %s1102_s24  ;;  %v925_v21 = vor.u32 %v1047_v19, %v922_v20  ;;  %v1046_v32 = vld [vmem:[%s1530_s5 + $0x64] sm:$0xf0]  ;;  %v1045_v34 = vld [vmem:[%s1530_s5 + $0x64] sm:$0xf]  ;;  %s726_s14 = sshll.u32 %s1103_s13, 4  ;;  %s728_s17 = sshll.u32 %s1534_s9, 4  ;;  %s727_s14 = int_to_ptr.vmem [resolvable:$true] %s726_s14  ;;  %s729_s17 = int_to_ptr.hbm [resolvable:$true] %s728_s17 }
  0x19   :  { %260 = vmatpush.bf16.msrb.mxu0 %v806_v2  ;;  %v913_v33 = vor.u32 %v1046_v32, %v912_v31  ;;  %v914_v35 = vld [vmem:[%s1530_s5 + $0x68] sm:$0xf0]  ;;  %v904_v37 = vld [vmem:[%s1530_s5 + $0x50] sm:$0xf]  ;;  %v1044_v38 = vld [vmem:[%s1530_s5 + $0x54] sm:$0xf0] }
  0x1a   :  { %273 = vmatpush.bf16.msrb.mxu1 %v810_v3  ;;  %v917_v36 = vor.u32 %v1045_v34, %v914_v35  ;;  %v1043_v39 = vld [vmem:[%s1530_s5 + $0x54] sm:$0xf]  ;;  %v905_v40 = vor.u32 %v1044_v38, %v904_v37  ;;  %v906_v41 = vld [vmem:[%s1530_s5 + $0x58] sm:$0xf0]  ;;  %v896_v43 = vld [vmem:[%s1530_s5 + $0x40] sm:$0xf] }
  0x1b   :  { %338 = vmatpush.bf16.msrb.mxu2 %v847_v6  ;;  %351 = vmatpush.bf16.msrb.mxu3 %v851_v9  ;;  %v909_v42 = vor.u32 %v1043_v39, %v906_v41  ;;  %v1042_v44 = vld [vmem:[%s1530_s5 + $0x44] sm:$0xf0]  ;;  %v1041_v45 = vld [vmem:[%s1530_s5 + $0x44] sm:$0xf]  ;;  %v898_v47 = vld [vmem:[%s1530_s5 + $0x48] sm:$0xf0] }
  0x1c   :  { %v897_v46 = vor.u32 %v1042_v44, %v896_v43  ;;  %v901_v48 = vor.u32 %v1041_v45, %v898_v47  ;;  %v888_v49 = vld [vmem:[%s1530_s5 + $0x30] sm:$0xf]  ;;  %v1040_v50 = vld [vmem:[%s1530_s5 + $0x34] sm:$0xf0]  ;;  %v1039_v54 = vld [vmem:[%s1530_s5 + $0x34] sm:$0xf] }
  0x1d   :  { %534 = vmatpush.bf16.msra.mxu0 %v921_v18  ;;  %v952_v51 = vld [vmem:[%s1530_s5 + $0xb0] sm:$0xf]  ;;  %v889_v52 = vor.u32 %v1040_v50, %v888_v49  ;;  %v1056_v53 = vld [vmem:[%s1530_s5 + $0xb4] sm:$0xf0]  ;;  %v890_v55 = vld [vmem:[%s1530_s5 + $0x38] sm:$0xf0] }
  0x1e   :  { %v953_v56 = vor.u32 %v1056_v53, %v952_v51  ;;  %v893_v57 = vor.u32 %v1039_v54, %v890_v55  ;;  %v1055_v58 = vld [vmem:[%s1530_s5 + $0xb4] sm:$0xf]  ;;  %v954_v59 = vld [vmem:[%s1530_s5 + $0xb8] sm:$0xf0]  ;;  %v880_v61 = vld [vmem:[%s1530_s5 + $0x20] sm:$0xf] }
  0x1f   :  { %339 = vmatpush.bf16.msrb.mxu2 %v839_v13  ;;  %352 = vmatpush.bf16.msrb.mxu3 %v843_v15  ;;  %v957_v60 = vor.u32 %v1055_v58, %v954_v59  ;;  %v1038_v62 = vld [vmem:[%s1530_s5 + $0x24] sm:$0xf0]  ;;  %v944_v0 = vld [vmem:[%s1530_s5 + $0xa0] sm:$0xf]  ;;  %v1037_v2 = vld [vmem:[%s1530_s5 + $0x24] sm:$0xf] }
  0x20   :  { %551 = vmatpush.bf16.msra.mxu1 %v953_v56  ;;  %v881_v63 = vor.u32 %v1038_v62, %v880_v61  ;;  %v1054_v1 = vld [vmem:[%s1530_s5 + $0xa4] sm:$0xf0]  ;;  %v882_v4 = vld [vmem:[%s1530_s5 + $0x28] sm:$0xf0]  ;;  %v1053_v5 = vld [vmem:[%s1530_s5 + $0xa4] sm:$0xf] }
  0x21   :  { %535 = vmatpush.bf16.msra.mxu0 %v913_v33  ;;  %v945_v3 = vor.u32 %v1054_v1, %v944_v0  ;;  %v946_v6 = vld [vmem:[%s1530_s5 + $0xa8] sm:$0xf0]  ;;  %v885_v7 = vor.u32 %v1037_v2, %v882_v4  ;;  %v872_v9 = vld [vmem:[%s1530_s5 + $0x10] sm:$0xf]  ;;  %v1036_v10 = vld [vmem:[%s1530_s5 + $0x14] sm:$0xf0] }
  0x22   :  { %v949_v8 = vor.u32 %v1053_v5, %v946_v6  ;;  %v936_v11 = vld [vmem:[%s1530_s5 + $0x90] sm:$0xf]  ;;  %v873_v12 = vor.u32 %v1036_v10, %v872_v9  ;;  %v1052_v13 = vld [vmem:[%s1530_s5 + $0x94] sm:$0xf0]  ;;  %v1035_v14 = vld [vmem:[%s1530_s5 + $0x14] sm:$0xf] }
  0x23   :  { %v937_v15 = vor.u32 %v1052_v13, %v936_v11  ;;  %v874_v16 = vld [vmem:[%s1530_s5 + $0x18] sm:$0xf0]  ;;  %v1051_v17 = vld [vmem:[%s1530_s5 + $0x94] sm:$0xf]  ;;  %v1049_v31 = vld [vmem:[%s1530_s5 + $0x84] sm:$0xf] }
  0x24   :  { %552 = vmatpush.bf16.msra.mxu1 %v945_v3  ;;  %v877_v18 = vor.u32 %v1035_v14, %v874_v16  ;;  %v938_v19 = vld [vmem:[%s1530_s5 + $0x98] sm:$0xf0]  ;;  %v930_v32 = vld [vmem:[%s1530_s5 + $0x88] sm:$0xf0]  ;;  %v1063_v39 = vld [vmem:[%s1532_s7 + $0x30] sm:$0xff]  ;;  %vm719_vm3 = vcmask 41984  }
  0x25   :  { %536 = vmatpush.bf16.msra.mxu0 %v905_v40  ;;  %v941_v20 = vor.u32 %v1051_v17, %v938_v19  ;;  %v933_v34 = vor.u32 %v1049_v31, %v930_v32  ;;  %v1064_v35 = vld [vmem:[%s1532_s7 + $0x38] sm:$0xff]  ;;  %v48_v41 = vld [vmem:[%s1527_s2] sm:$0x3]  ;;  %v802_v47 = vld [vmem:[%s1527_s2 + $0x4] sm:$0x3] }
  0x26   :  { %v1068_v40 = vld [vmem:[%s1532_s7 + $0x58] sm:$0xff]  ;;  %v50_v49 = vperm.slane %v48_v41, 0  ;;  %v208_v53 = vperm.slane %v802_v47, 0  ;;  %v209_v54 = vperm.slane %v802_v47, 1  ;;  %v362_v9 = vld [vmem:[%s1528_s3] sm:$0x3] }
  0x27   :  { %v1060_v2 = vld [vmem:[%s1532_s7 + $0x18] sm:$0xff]  ;;  %v370_v16 = vld [vmem:[%s1529_s4] sm:$0x3]  ;;  %v365_v17 = vperm.slane %v362_v9, 1 }
  0x28   :  { %553 = vmatpush.bf16.msra.mxu1 %v937_v15  ;;  %v364_v15 = vperm.slane %v362_v9, 0 }
  0x29   :  { %537 = vmatpush.bf16.msra.mxu0 %v897_v46 }
  0x2d   :  { %538 = vmatpush.bf16.msra.mxu0 %v889_v52 }
  0x31   :  { %539 = vmatpush.bf16.msra.mxu0 %v881_v63 }
  0x35   :  { %540 = vmatpush.bf16.msra.mxu0 %v873_v12  ;;  %v1059_v12 = vld [vmem:[%s1532_s7 + $0x10] sm:$0xff] }
  0x82   :  { %v215_v22 = vpop.permute.xlu1 %214  ;;  %v134_v23 = vpop.permute.xlu0 %133 }
  0x83   :  { %794 = vmatmul.msk.bf16.vlgmr.msra.gmra.mxu2 %vm84_vm0, %v134_v23  ;;  %795 = vmatmul.msk.bf16.vlgmr.msra.gmra.mxu3 %vm84_vm0, %v134_v23 }
  0x84   :  { %560 = vmatpush.bf16.msra.mxu2 %v925_v21  ;;  %577 = vmatpush.bf16.msra.mxu3 %v957_v60  ;;  %v864_v21 = vld [vmem:[%s1530_s5] sm:$0xf]  ;;  %v835_v60 = vld [vmem:[%s1527_s2 + $0x6] sm:$0x3] }
  0x85   :  { %v293_v4 = vperm.slane %v835_v60, 0  ;;  %v294_v5 = vperm.slane %v835_v60, 1 }
  0x88   :  { %561 = vmatpush.bf16.msra.mxu2 %v917_v36  ;;  %578 = vmatpush.bf16.msra.mxu3 %v949_v8  ;;  %v769_v36 = vld [vmem:[%s1527_s2 + $0x2] sm:$0x3] }
  0x89   :  { %v126_v43 = vperm.slane %v769_v36, 0  ;;  %v127_v44 = vperm.slane %v769_v36, 1  ;;  %v1058_v36 = vld [vmem:[%s1532_s7 + $0x8] sm:$0xff] }
  0x8a   :  { %v217_v24 = vpop.permute.xlu1 %216  ;;  %v298_v28 = vpop.permute.xlu0 %297 }
  0x8b   :  { %v219_v25 = vsel %vm218_vm1, %v215_v22, %v217_v24  ;;  %v1034_v22 = vld [vmem:[%s1530_s5 + $0x4] sm:$0xf0]  ;;  %v928_v24 = vld [vmem:[%s1530_s5 + $0x80] sm:$0xf] }
  0x8c   :  { %827 = vmatmul.msk.bf16.vlgmr.msrb.gmra.mxu0 %vm84_vm0, %v219_v25  ;;  %828 = vmatmul.msk.bf16.vlgmr.msrb.gmra.mxu1 %vm84_vm0, %v219_v25  ;;  %v865_v23 = vor.u32 %v1034_v22, %v864_v21  ;;  %v1050_v25 = vld [vmem:[%s1530_s5 + $0x84] sm:$0xf0] }
  0x8d   :  { %562 = vmatpush.bf16.msra.mxu2 %v909_v42  ;;  %579 = vmatpush.bf16.msra.mxu3 %v941_v20  ;;  %v51_v42 = vperm.slane %v48_v41, 1  ;;  %v404_v41 = vld [vmem:[%s1531_s6] sm:$0x3] }
  0x8e   :  { %v1321_v27 = vpop.f32.mrf.mxu1  ;;  %541 = vmatpush.bf16.msra.mxu0 %v865_v23  ;;  %v372_v23 = vperm.slane %v370_v16, 0  ;;  %v407_v47 = vperm.slane %v404_v41, 1 }
  0x8f   :  { %v1319_v26 = vpop.f32.mrf.mxu0  ;;  %v111_v50 = vadd.f32 %v1321_v27, %v51_v42  ;;  %v406_v42 = vperm.slane %v404_v41, 0 }
  0x90   :  { %v98_v58 = vadd.f32 %v1319_v26, %v50_v49 }
  0x91   :  { %563 = vmatpush.bf16.msra.mxu2 %v901_v48  ;;  %580 = vmatpush.bf16.msra.mxu3 %v933_v34  ;;  %v1062_v48 = vld [vmem:[%s1532_s7 + $0x28] sm:$0xff]  ;;  %v115_v59 = vmax.f32 %v111_v50, 0.0 }
  0x92   :  { %v114_v3 = vmax.f32 %v98_v58, 0.0 }
  0x93   :  { %860 = vmatmul.msk.bf16.vlgmr.msrb.gmra.mxu2 %vm84_vm0, %v298_v28  ;;  %861 = vmatmul.msk.bf16.vlgmr.msrb.gmra.mxu3 %vm84_vm0, %v298_v28  ;;  %v1033_v28 = vld [vmem:[%s1530_s5 + $0x4] sm:$0xf] }
  0x95   :  { %564 = vmatpush.bf16.msra.mxu2 %v893_v57  ;;  %710 = vmatpush.bf16.msrb.mxu3 %v1068_v40  ;;  %v1061_v57 = vld [vmem:[%s1532_s7 + $0x20] sm:$0xff] }
  0x96   :  { %v112_v30 = vpop.f32.mrf.mxu1  ;;  %v1065_v40 = vld [vmem:[%s1532_s7 + $0x40] sm:$0xff] }
  0x97   :  { %v99_v29 = vpop.f32.mrf.mxu0  ;;  %v866_v30 = vld [vmem:[%s1530_s5 + $0x8] sm:$0xf0] }
  0x98   :  { %v929_v29 = vor.u32 %v1050_v25, %v928_v24  ;;  %v869_v33 = vor.u32 %v1033_v28, %v866_v30  ;;  %v373_v25 = vperm.slane %v370_v16, 1 }
  0x99   :  { %565 = vmatpush.bf16.msra.mxu2 %v885_v7 }
  0x9a   :  { %554 = vmatpush.bf16.msra.mxu1 %v929_v29 }
  0x9d   :  { %566 = vmatpush.bf16.msra.mxu2 %v877_v18 }
  0x9e   :  { %693 = vmatpush.bf16.msrb.mxu1 %v1064_v35 }
  0xa1   :  { %567 = vmatpush.bf16.msra.mxu2 %v869_v33 }
  0xa2   :  { %694 = vmatpush.bf16.msrb.mxu1 %v1063_v39  ;;  %v1066_v39 = vld [vmem:[%s1532_s7 + $0x48] sm:$0xff] }
  0xa6   :  { %695 = vmatpush.bf16.msrb.mxu1 %v1062_v48 }
  0xaa   :  { %696 = vmatpush.bf16.msrb.mxu1 %v1061_v57 }
  0xae   :  { %697 = vmatpush.bf16.msrb.mxu1 %v1060_v2 }
  0xb2   :  { %698 = vmatpush.bf16.msrb.mxu1 %v1059_v12 }
  0xb6   :  { %699 = vmatpush.bf16.msrb.mxu1 %v1058_v36 }
 0x106   :  { %v177_v37 = vpop.f32.mrf.mxu2  ;;  %v190_v38 = vpop.f32.mrf.mxu3 }
 0x107   :  { %v178_v51 = vadd.f32 %v177_v37, %v126_v43  ;;  %v191_v52 = vadd.f32 %v190_v38, %v127_v44  ;;  %v1067_v37 = vld [vmem:[%s1532_s7 + $0x50] sm:$0xff]  ;;  %v1057_v38 = vld [vmem:[%s1532_s7] sm:$0xff] }
 0x108   :  { %711 = vmatpush.bf16.msrb.mxu3 %v1067_v37  ;;  %700 = vmatpush.bf16.msrb.mxu1 %v1057_v38 }
 0x109   :  { %v262_v45 = vpop.f32.mrf.mxu0  ;;  %v275_v46 = vpop.f32.mrf.mxu1  ;;  %v194_v61 = vmax.f32 %v178_v51, 0.0  ;;  %v195_v27 = vmax.f32 %v191_v52, 0.0 }
 0x10a   :  { %v263_v62 = vadd.f32 %v262_v45, %v208_v53  ;;  %v276_v63 = vadd.f32 %v275_v46, %v209_v54 }
 0x10b   :  { %v196_v26 = vmul.f32 %v194_v61, %v114_v3  ;;  %v197_v6 = vmul.f32 %v195_v27, %v115_v59  ;;  %v1073_v61 = vld [vmem:[%s1533_s8] ss:$0 sm:$0xff] }
 0x10c   :  { %v279_v7 = vmax.f32 %v263_v62, 0.0  ;;  %v280_v8 = vmax.f32 %v276_v63, 0.0  ;;  %712 = vmatpush.bf16.msrb.mxu3 %v1066_v39 }
 0x10e   :  { %v179_v55 = vpop.f32.mrf.mxu2  ;;  %v192_v56 = vpop.f32.mrf.mxu3  ;;  %v281_v18 = vmul.f32 %v279_v7, %v196_v26  ;;  %v282_v19 = vmul.f32 %v280_v8, %v197_v6 }
 0x110   :  { %713 = vmatpush.bf16.msrb.mxu3 %v1065_v40 }
 0x111   :  { %v264_v0 = vpop.f32.mrf.mxu0  ;;  %v277_v1 = vpop.f32.mrf.mxu1 }
 0x116   :  { %v341_v10 = vpop.f32.mrf.mxu2  ;;  %v354_v11 = vpop.f32.mrf.mxu3 }
 0x117   :  { %v342_v13 = vadd.f32 %v341_v10, %v293_v4  ;;  %v355_v14 = vadd.f32 %v354_v11, %v294_v5 }
 0x119   :  { %v358_v20 = vmax.f32 %v342_v13, 0.0  ;;  %v359_v21 = vmax.f32 %v355_v14, 0.0 }
 0x11b   :  { %v360_v22 = vmul.f32 %v358_v20, %v281_v18  ;;  %v361_v24 = vmul.f32 %v359_v21, %v282_v19 }
 0x11d   :  { %v368_v28 = vmul.f32 %v364_v15, %v360_v22  ;;  %v369_v29 = vmul.f32 %v365_v17, %v361_v24 }
 0x11e   :  { %v343_v30 = vpop.f32.mrf.mxu2  ;;  %v356_v31 = vpop.f32.mrf.mxu3 }
 0x11f   :  { %v376_v32 = vadd.f32 %v372_v23, %v368_v28  ;;  %v377_v33 = vadd.f32 %v373_v25, %v369_v29 }
 0x121   :  { %v379_v34 = vpack.c.bf16 %v377_v33, %v377_v33  ;;  %v378_v35 = vpack.c.bf16 %v376_v32, %v376_v32 }
 0x123   :  { %542 = vmatmul.bf16.vlgmr.msra.gmra.mxu0 %v378_v35  ;;  %958 = vmatmul.msk.bf16.vlgmr.msra.gmra.mxu1 %vm530_vm2, %v379_v34 }
 0x124   :  { %568 = vmatmul.bf16.vlgmr.msra.gmra.mxu2 %v378_v35  ;;  %959 = vmatmul.msk.bf16.vlgmr.msra.gmra.mxu3 %vm530_vm2, %v379_v34 }
 0x1a0   :  { %v543_v43 = vpop.f32.mrf.mxu0  ;;  %v556_v44 = vpop.f32.mrf.mxu1 }
 0x1a1   :  { %v544_v45 = vadd.f32 %v543_v43, %v406_v42 }
 0x1a3   :  { %v557_v46 = vadd.f32 %v556_v44, %v544_v45 }
 0x1a5   :  { %v586_v48 = vmax.f32 %v557_v46, 0.0 }
 0x1a7   :  { %v588_v49 = vpack.c.bf16 %v586_v48, %v586_v48  ;;  %v569_v50 = vpop.f32.mrf.mxu2  ;;  %v582_v51 = vpop.f32.mrf.mxu3 }
 0x1a8   :  { %v570_v52 = vadd.f32 %v569_v50, %v407_v47  ;;  %v545_v53 = vpop.f32.mrf.mxu0  ;;  %v558_v54 = vpop.f32.mrf.mxu1 }
 0x1a9   :  { %701 = vmatmul.bf16.vlgmr.msrb.gmra.mxu1 %v588_v49 }
 0x1aa   :  { %v583_v55 = vadd.f32 %v582_v51, %v570_v52 }
 0x1ac   :  { %v587_v56 = vmax.f32 %v583_v55, 0.0 }
 0x1ae   :  { %v589_v57 = vpack.c.bf16 %v587_v56, %v587_v56 }
 0x1af   :  { %v571_v58 = vpop.f32.mrf.mxu2  ;;  %v584_v59 = vpop.f32.mrf.mxu3 }
 0x1b0   :  { %1008 = vmatmul.msk.bf16.vlgmr.msrb.gmra.mxu3 %vm530_vm2, %v589_v57 }
 0x226   :  { %v702_v60 = vpop.f32.mrf.mxu1 }
 0x227   :  { %v703_v62 = vadd.f32 %v1073_v61, %v702_v60 }
 0x22e   :  { %v704_v27 = vpop.f32.mrf.mxu1 }
 0x233   :  { %v715_v63 = vpop.f32.mrf.mxu3 }
 0x234   :  { %v716_v0 = vadd.f32 %v715_v63, %v703_v62 }
 0x236   :  { %720 = vst.msk [vmem:[#allocation2] sm:$0x3] %vm719_vm3, %v716_v0 }
 0x237   :  { %731 = dma.vmem_to_hbm [thread:$0]  %s727_s14, 32, %s729_s17, [#allocation3]  }
 0x23b   :  { %v717_v1 = vpop.f32.mrf.mxu3 }
 0x23c   :  { %1098 = dma.done.wait [#allocation3], 32  }
 0x23d   :  { %1099 = vsyncadd [#allocation3], 4294967264 }
 0x23e   :  { %736 = vsyncpa [#allocation3], 1 }

</bundles_post_ra>
